<compile_context>
chip_gen: v7x
topology: tpu7x:2x2x1
jax: 0.10.0
libtpu: 0.0.40
codegen_flags: <defaults>
</compile_context>

<pallas_src>
import functools

import jax
import jax.numpy as jnp
from jax.experimental import pallas as pl
from jax.experimental.pallas import tpu as pltpu

_LANE = 128
_SUBLANE = 8
_TARGET_TILE_BYTES = 1 << 20  # per-input-tile budget; safe on v5e/v6e/v7x


def _round_up(n: int, m: int) -> int:
    return (n + m - 1) // m * m


def _dropblock_kernel(x_ref, seeds_ref, y_ref, psum_ref, *,
                      block_size: int, n_rows: int, n_cols: int, tile_r: int):
    """One row tile: mask = 1 - maxpool1d(seeds); y = x*mask (unscaled);
    psum = sum of mask over the valid (un-padded) region of this tile."""
    i = pl.program_id(0)
    r, l_pad = x_ref.shape

    seeds = seeds_ref[...].astype(jnp.float32)   # exact 0/1 map, zero in padding

    # max_pool1d(kernel=block_size, stride=1, pad=block_size//2).
    # PyTorch pads with -inf; seeds are >= 0 so shifting in zeros is identical.
    pad = block_size // 2
    pooled = seeds
    for k in range(1, pad + 1):
        z = jnp.zeros((r, k), jnp.float32)
        shift_l = jnp.concatenate([seeds[:, k:], z], axis=1)          # seeds[j+k]
        shift_r = jnp.concatenate([z, seeds[:, :l_pad - k]], axis=1)  # seeds[j-k]
        pooled = jnp.maximum(pooled, jnp.maximum(shift_l, shift_r))

    mask = 1.0 - pooled

    # Partial sum of the mask over real (un-padded) rows / cols only.
    row = jax.lax.broadcasted_iota(jnp.int32, (r, l_pad), 0) + i * tile_r
    col = jax.lax.broadcasted_iota(jnp.int32, (r, l_pad), 1)
    valid = (row < n_rows) & (col < n_cols)
    psum = jnp.sum(jnp.where(valid, mask, 0.0))
    psum_ref[...] = jnp.broadcast_to(psum, psum_ref.shape)

    # Un-scaled masked output; the scalar rescale is applied in the epilogue.
    y_ref[...] = (x_ref[...].astype(jnp.float32) * mask).astype(y_ref.dtype)


@functools.partial(jax.jit, static_argnames=("block_size",))
def _dropblock_fwd(x, gamma, key, *, block_size: int):
    B, D, L = x.shape
    R = B * D
    dtype = x.dtype
    itemsize = jnp.dtype(dtype).itemsize

    l_pad = _round_up(L, _LANE)
    rows_fit = max(_SUBLANE,
                   (_TARGET_TILE_BYTES // (l_pad * itemsize)) // _SUBLANE * _SUBLANE)
    tile_r = min(rows_fit, _round_up(R, _SUBLANE))
    r_pad = _round_up(R, tile_r)
    n_tiles = r_pad // tile_r

    # Bernoulli(gamma) seed map from a runtime gamma scalar (no recompilation
    # as gamma follows the training-step schedule).
    u = jax.random.uniform(key, (R, L), dtype=jnp.float32)
    seeds = (u < gamma).astype(dtype)

    x2d = jnp.pad(x.reshape(R, L), ((0, r_pad - R), (0, l_pad - L)))
    seeds2d = jnp.pad(seeds, ((0, r_pad - R), (0, l_pad - L)))

    kernel = functools.partial(
        _dropblock_kernel,
        block_size=block_size, n_rows=R, n_cols=L, tile_r=tile_r)

    y_unscaled, psums = pl.pallas_call(
        kernel,
        grid=(n_tiles,),
        in_specs=(
            pl.BlockSpec((tile_r, l_pad), lambda i: (i, 0)),
            pl.BlockSpec((tile_r, l_pad), lambda i: (i, 0)),
        ),
        out_specs=(
            pl.BlockSpec((tile_r, l_pad), lambda i: (i, 0)),
            pl.BlockSpec((1, _SUBLANE, _LANE), lambda i: (i, 0, 0)),
        ),
        out_shape=(
            jax.ShapeDtypeStruct((r_pad, l_pad), dtype),
            jax.ShapeDtypeStruct((n_tiles, _SUBLANE, _LANE), jnp.float32),
        ),
        compiler_params=pltpu.CompilerParams(
            dimension_semantics=("parallel",),
            vmem_limit_bytes=32 * 1024 * 1024,
        ),
    )(x2d, seeds2d)

    total = jnp.sum(psums[:, 0, 0])
    numel = jnp.float32(R * L)
    # Guard the 0/0 hazard (all elements dropped); only differs from the
    # PyTorch reference in that degenerate case.
    scale = numel / jnp.maximum(total, 1.0)

    y = (y_unscaled[:R, :L].astype(jnp.float32) * scale).astype(dtype)
    return y.reshape(B, D, L)


class DropBlock1d:
    """JAX/Pallas port of the PyTorch DropBlock1d module (training forward)."""

    def __init__(self, block_size: int, drop_prob: float, sch_steps: int):
        # PyTorch's max_pool1d with pad=block_size//2 only preserves L for odd
        # block_size (even sizes would break the original module too).
        assert block_size % 2 == 1, "block_size must be odd to preserve length"
        self.block_size = block_size
        self.drop_prob = drop_prob
        self.sch_steps = sch_steps
        self.step = 0          # mirrors the registered 'step' buffer
        self.training = True

    def __call__(self, x: jax.Array, seed: int = 0) -> jax.Array:
        if (not self.training) or self.drop_prob == 0.0:
            return x
        # schedule: step = clamp(step + 1, max=sch_steps)
        self.step = min(self.step + 1, self.sch_steps)
        drop_prob = self.step / self.sch_steps * self.drop_prob
        gamma = drop_prob / self.block_size
        key = jax.random.fold_in(jax.random.PRNGKey(seed), self.step)
        return _dropblock_fwd(x, jnp.float32(gamma), key,
                              block_size=self.block_size)


def _reference(x, gamma, key, block_size):
    """Pure-JAX mirror of the PyTorch forward using the same seed map."""
    B, D, L = x.shape
    R = B * D
    u = jax.random.uniform(key, (R, L), dtype=jnp.float32)
    seeds = (u < gamma).astype(jnp.float32)
    pad = block_size // 2
    padded = jnp.pad(seeds, ((0, 0), (pad, pad)))
    pooled = padded[:, :L]
    for k in range(1, block_size):
        pooled = jnp.maximum(pooled, padded[:, k:k + L])
    mask = 1.0 - pooled
    scale = (R * L) / jnp.maximum(mask.sum(), 1.0)
    y = x.reshape(R, L).astype(jnp.float32) * mask * scale
    return y.reshape(B, D, L).astype(x.dtype)


if __name__ == "__main__":
    B, D, L = 2, 4, 16
    x = jax.random.normal(jax.random.PRNGKey(0), (B, D, L), dtype=jnp.float32)

    module = DropBlock1d(block_size=5, drop_prob=0.3, sch_steps=10)
    y = jax.block_until_ready(module(x, seed=1234))
    assert y.shape == (B, D, L) and y.dtype == x.dtype
    assert bool(jnp.all(jnp.isfinite(y)))

    # Check against a pure-JAX reference using the same gamma / key schedule.
    gamma = (module.step / module.sch_steps * module.drop_prob) / module.block_size
    key = jax.random.fold_in(jax.random.PRNGKey(1234), module.step)
    y_ref = _reference(x, gamma, key, module.block_size)
    assert bool(jnp.allclose(y, y_ref, rtol=1e-5, atol=1e-5)), "mismatch vs reference"

    # bf16 HBM I/O path (dtype-preserving kernel).
    xb = x.astype(jnp.bfloat16)
    yb = jax.block_until_ready(module(xb, seed=7))
    assert yb.shape == (B, D, L) and yb.dtype == jnp.bfloat16
    assert bool(jnp.all(jnp.isfinite(yb.astype(jnp.float32))))

    print("KERNEL_OK")
</pallas_src>

<mosaic_0001>
module attributes {stable_mosaic.version = 11 : i64} {
  func.func @_dropblock_kernel(%arg0: i32, %arg1: memref<8x128xf32, #tpu.memory_space<vmem>>, %arg2: memref<8x128xf32, #tpu.memory_space<vmem>>, %arg3: memref<8x128xf32, #tpu.memory_space<vmem>>, %arg4: memref<1x8x128xf32, #tpu.memory_space<vmem>>) attributes {dimension_semantics = [#tpu.dimension_semantics<parallel>], iteration_bounds = array<i64: 1>, scalar_prefetch = 0 : i64, scratch_operands = 0 : i64, tpu.core_type = #tpu.core_type<tc>, window_params = [{transform_indices = @transform_0, window_bounds = array<i64: 8, 128>}, {transform_indices = @transform_1, window_bounds = array<i64: 8, 128>}, {transform_indices = @transform_2, window_bounds = array<i64: 8, 128>}, {transform_indices = @transform_3, window_bounds = array<i64: 1, 8, 128>}]} {
    %c0 = arith.constant 0 : index
    %c0_0 = arith.constant 0 : index
    %0 = vector.load %arg2[%c0, %c0_0] : memref<8x128xf32, #tpu.memory_space<vmem>>, vector<8x128xf32>
    %cst = arith.constant 0.000000e+00 : f32
    %1 = vector.broadcast %cst : f32 to vector<8x1xf32>
    %2 = vector.extract_strided_slice %0 {offsets = [0, 1], sizes = [8, 127], strides = [1, 1]} : vector<8x128xf32> to vector<8x127xf32>
    %3 = tpu.concatenate %2, %1 in 1 : vector<8x127xf32>, vector<8x1xf32> -> vector<8x128xf32>
    %4 = vector.extract_strided_slice %0 {offsets = [0, 0], sizes = [8, 127], strides = [1, 1]} : vector<8x128xf32> to vector<8x127xf32>
    %5 = tpu.concatenate %1, %4 in 1 : vector<8x1xf32>, vector<8x127xf32> -> vector<8x128xf32>
    %6 = arith.maximumf %3, %5 : vector<8x128xf32>
    %7 = arith.maximumf %0, %6 : vector<8x128xf32>
    %cst_1 = arith.constant 0.000000e+00 : f32
    %8 = vector.broadcast %cst_1 : f32 to vector<8x2xf32>
    %9 = vector.extract_strided_slice %0 {offsets = [0, 2], sizes = [8, 126], strides = [1, 1]} : vector<8x128xf32> to vector<8x126xf32>
    %10 = tpu.concatenate %9, %8 in 1 : vector<8x126xf32>, vector<8x2xf32> -> vector<8x128xf32>
    %11 = vector.extract_strided_slice %0 {offsets = [0, 0], sizes = [8, 126], strides = [1, 1]} : vector<8x128xf32> to vector<8x126xf32>
    %12 = tpu.concatenate %8, %11 in 1 : vector<8x2xf32>, vector<8x126xf32> -> vector<8x128xf32>
    %13 = arith.maximumf %10, %12 : vector<8x128xf32>
    %14 = arith.maximumf %7, %13 : vector<8x128xf32>
    %cst_2 = arith.constant 1.000000e+00 : f32
    %15 = vector.broadcast %cst_2 : f32 to vector<8x128xf32>
    %16 = arith.subf %15, %14 : vector<8x128xf32>
    %17 = tpu.iota {dimensions = array<i32: 0>} : vector<8x128xi32>
    %c8_i32 = arith.constant 8 : i32
    %18 = arith.muli %arg0, %c8_i32 : i32
    %19 = vector.broadcast %18 : i32 to vector<8x128xi32>
    %20 = arith.addi %17, %19 : vector<8x128xi32>
    %21 = tpu.iota {dimensions = array<i32: 1>} : vector<8x128xi32>
    %c8_i32_3 = arith.constant 8 : i32
    %22 = vector.broadcast %c8_i32_3 : i32 to vector<8x128xi32>
    %23 = arith.cmpi slt, %20, %22 : vector<8x128xi32>
    %c16_i32 = arith.constant 16 : i32
    %24 = vector.broadcast %c16_i32 : i32 to vector<8x128xi32>
    %25 = arith.cmpi slt, %21, %24 : vector<8x128xi32>
    %26 = arith.andi %23, %25 : vector<8x128xi1>
    %cst_4 = arith.constant 0.000000e+00 : f32
    %27 = vector.broadcast %cst_4 : f32 to vector<8x128xf32>
    %28 = arith.select %26, %16, %27 : vector<8x128xi1>, vector<8x128xf32>
    %29 = vector.shape_cast %28 : vector<8x128xf32> to vector<1x8x128xf32>
    %cst_5 = arith.constant dense<0.000000e+00> : vector<1xf32>
    %30 = vector.multi_reduction <add>, %29, %cst_5 [1, 2] : vector<1x8x128xf32> to vector<1xf32>
    %31 = vector.shape_cast %30 : vector<1xf32> to vector<1x1x1xf32>
    %32 = vector.extract %31[0, 0, 0] : f32 from vector<1x1x1xf32>
    %33 = vector.broadcast %32 : f32 to vector<1x8x128xf32>
    %c0_6 = arith.constant 0 : index
    %c0_7 = arith.constant 0 : index
    %c0_8 = arith.constant 0 : index
    %34 = vector.load %arg4[%c0_6, %c0_7, %c0_8] : memref<1x8x128xf32, #tpu.memory_space<vmem>>, vector<1x8x128xf32>
    tpu.vector_store %arg4[%c0_6, %c0_7, %c0_8], %33 {strides = array<i32>} : memref<1x8x128xf32, #tpu.memory_space<vmem>>, vector<1x8x128xf32>,
    %c0_9 = arith.constant 0 : index
    %c0_10 = arith.constant 0 : index
    %35 = vector.load %arg1[%c0_9, %c0_10] : memref<8x128xf32, #tpu.memory_space<vmem>>, vector<8x128xf32>
    %36 = arith.mulf %35, %16 : vector<8x128xf32>
    %c0_11 = arith.constant 0 : index
    %c0_12 = arith.constant 0 : index
    %37 = vector.load %arg3[%c0_11, %c0_12] : memref<8x128xf32, #tpu.memory_space<vmem>>, vector<8x128xf32>
    tpu.vector_store %arg3[%c0_11, %c0_12], %36 {strides = array<i32>} : memref<8x128xf32, #tpu.memory_space<vmem>>, vector<8x128xf32>,
    return
  }
  func.func @transform_0(%arg0: i32) -> (i32, i32) {
    %c0_i32 = arith.constant 0 : i32
    %c0_i32_0 = arith.constant 0 : i32
    return %arg0, %c0_i32 : i32, i32
  }
  func.func @transform_1(%arg0: i32) -> (i32, i32) {
    %c0_i32 = arith.constant 0 : i32
    %c0_i32_0 = arith.constant 0 : i32
    return %arg0, %c0_i32 : i32, i32
  }
  func.func @transform_2(%arg0: i32) -> (i32, i32) {
    %c0_i32 = arith.constant 0 : i32
    %c0_i32_0 = arith.constant 0 : i32
    return %arg0, %c0_i32 : i32, i32
  }
  func.func @transform_3(%arg0: i32) -> (i32, i32, i32) {
    %c0_i32 = arith.constant 0 : i32
    %c0_i32_0 = arith.constant 0 : i32
    %c0_i32_1 = arith.constant 0 : i32
    return %arg0, %c0_i32, %c0_i32_0 : i32, i32, i32
  }
}

</mosaic_0001>

<bundles_post_ra>
// kernel: _dropblock_fwd.1
= control target key start
LH: loop header
LB: loop body
LE: loop exit
PB: predicated region body
PF: predicated region fallthrough
CT: control target
= control target key end

     0   :  { %s79_s14 = smov 126   ;;  %s80_s15 = smov 127   ;;  %vm18_vm0 = vcmask 1039360   ;;  %vm35_vm1 = vcmask 15360   ;;  %vm23_vm2 = vcmask 7168   ;;  %v45_v3 = vlaneseq  ;;  %s115_s1 = inlined_call_operand.vmem [shape: f32[8,128], index: 1, kind: input, shape index: {}]   ;;  %s116_s0 = inlined_call_operand.vmem [shape: f32[8,128], index: 0, kind: input, shape index: {}]   ;;  %s117_s2 = inlined_call_operand.vmem [shape: f32[8,128], index: 2, kind: output, shape index: {0}]   ;;  %s118_s3 = inlined_call_operand.vmem [shape: f32[1,8,128], index: 3, kind: output, shape index: {1}]  }
   0x1   :  { %v13_v0 = vld [vmem:[%s115_s1] sm:$0xff]  ;;  %s81_s16 = smov 2   ;;  %s82_s17 = smov 1   ;;  %vm30_vm3 = vcmask 1031168  }
   0x2   :  { %27 = vrot.lane.b32.xlu1 %v13_v0, %s79_s14  ;;  %15 = vrot.lane.b32.xlu0 %v13_v0, %s80_s15  ;;  %v46_v11 = vand.u32 127, %v45_v3  ;;  %v62_v15 = vld [vmem:[%s116_s0] sm:$0xff] }
   0x4   :  { %vm48_vm4 = vcmp.lt.s32.totalorder %v46_v11, 16 }
   0x6   :  { %32 = vrot.lane.b32.xlu1 %v13_v0, %s81_s16  ;;  %20 = vrot.lane.b32.xlu0 %v13_v0, %s82_s17 }
  0x74   :  { %v28_v1 = vpop.permute.xlu1 %27  ;;  %v16_v2 = vpop.permute.xlu0 %15 }
  0x75   :  { %v19_v6 = vsel %vm18_vm0, %v16_v2, 0.0  ;;  %v31_v10 = vsel %vm30_vm3, %v28_v1, 0.0 }
  0x78   :  { %v33_v4 = vpop.permute.xlu1 %32  ;;  %v21_v5 = vpop.permute.xlu0 %20 }
  0x79   :  { %v36_v7 = vsel %vm35_vm1, 0.0, %v33_v4  ;;  %v24_v8 = vsel %vm23_vm2, 0.0, %v21_v5 }
  0x7a   :  { %v25_v9 = vmax.f32 %v19_v6, %v24_v8  ;;  %v37_v12 = vmax.f32 %v31_v10, %v36_v7 }
  0x7c   :  { %v26_v13 = vmax.f32 %v13_v0, %v25_v9 }
  0x7e   :  { %v38_v14 = vmax.f32 %v26_v13, %v37_v12 }
  0x80   :  { %v39_v16 = vsub.f32 1.0, %v38_v14 }
  0x82   :  { %v50_v17 = vsel %vm48_vm4, %v39_v16, 0.0  ;;  %v63_v18 = vmul.f32 %v62_v15, %v39_v16 }
  0x83   :  { %51 = vadd.xlane.f32.xlu0 %v50_v17 }
  0x84   :  { %64 = vst [vmem:[%s117_s2] sm:$0xff] %v63_v18 }
 0x110   :  { %v52_v19 = vpop.xlane.xlu0 %51 }
 0x111   :  { %v53_v20 = vrot.slane %v52_v19, 4 }
 0x113   :  { %v54_v21 = vadd.f32 %v53_v20, %v52_v19 }
 0x115   :  { %v55_v22 = vrot.slane %v54_v21, 2 }
 0x117   :  { %v56_v23 = vadd.f32 %v55_v22, %v54_v21 }
 0x119   :  { %v57_v24 = vrot.slane %v56_v23, 1 }
 0x11b   :  { %v58_v25 = vadd.f32 %v57_v24, %v56_v23 }
 0x11d   :  { %73 = vpush %v58_v25 }
 0x14e   :  { %s74_s21 = spop %73 }
 0x14f   :  { %v60_v26 = vstv %s74_s21 }
 0x150   :  { %61 = vst [vmem:[%s118_s3] sm:$0xff] %v60_v26 }

</bundles_post_ra>
